<compile_context>
chip_gen: v5e
topology: v5e:2x2
jax: 0.10.0
libtpu: 0.0.40
codegen_flags: <defaults>
</compile_context>

<pallas_src>
import functools

import jax
import jax.numpy as jnp
from jax.experimental import pallas as pl
from jax.experimental.pallas import tpu as pltpu

DROPOUT_RATE = 0.2  # matches the module-level `dropout` constant in gpt.py


def _ffn_kernel(x_ref, w1_ref, b1_ref, w2_ref, b2_ref, o_ref, acc_ref):
    """One (row-tile, hidden-slab) grid step.

    x_ref  : (tm, D)   bf16 VMEM  (resident across the hidden axis)
    w1_ref : (D, tH)   bf16 VMEM  (streamed slab of W1)
    b1_ref : (1, tH)   f32  VMEM
    w2_ref : (tH, D)   bf16 VMEM  (streamed slab of W2)
    b2_ref : (1, D)    f32  VMEM
    o_ref  : (tm, D)   output dtype
    acc_ref: (tm, D)   f32 scratch accumulator (resident across the hidden axis)
    """
    k = pl.program_id(1)

    @pl.when(k == 0)
    def _():
        acc_ref[...] = jnp.zeros_like(acc_ref)

    # First linear on this hidden slab: bf16 MXU matmul, f32 accumulation.
    h = jnp.dot(x_ref[...], w1_ref[...], preferred_element_type=jnp.float32)
    # Bias + ReLU in f32 on the VPU.
    h = jnp.maximum(h + b1_ref[...], 0.0)
    # Second linear: this slab's partial contribution to the output.
    acc_ref[...] += jnp.dot(h.astype(w2_ref.dtype), w2_ref[...],
                            preferred_element_type=jnp.float32)

    @pl.when(k == pl.num_programs(1) - 1)
    def _():
        # Dropout is identity in eval mode.
        # TODO(synk): training-mode dropout would need pltpu.prng_seed /
        # pltpu.prng_random_bits plus a 1/(1-p) scale; stochastic, so it
        # cannot match torch bit-for-bit.
        o_ref[...] = (acc_ref[...] + b2_ref[...]).astype(o_ref.dtype)


def _pick_hidden_chunk(hidden, target=512):
    """Largest multiple-of-128 divisor of `hidden` that is <= target (else full)."""
    if hidden <= target:
        return hidden
    for c in range(target, 127, -128):
        if hidden % c == 0:
            return c
    return hidden  # fall back to fully-resident weights


@functools.partial(jax.jit, static_argnames=("tm", "th_target"))
def feed_forward(x, w1, b1, w2, b2, *, tm=256, th_target=512):
    """x: (B, T, n_embd) -> (B, T, n_embd)."""
    B, T, D = x.shape
    H = w1.shape[1]
    M = B * T

    # bf16 operands for the MXU; biases stay f32 (bias-add / ReLU are f32 VPU).
    x2 = x.reshape(M, D).astype(jnp.bfloat16)
    w1 = w1.astype(jnp.bfloat16)
    w2 = w2.astype(jnp.bfloat16)
    b1 = b1.reshape(1, H).astype(jnp.float32)
    b2 = b2.reshape(1, D).astype(jnp.float32)

    tm = min(tm, M)
    tH = _pick_hidden_chunk(H, th_target)
    grid = (pl.cdiv(M, tm), H // tH)

    out_bytes = jnp.dtype(x.dtype).itemsize
    vmem_need = (
        2 * tm * D * 2            # x tile (bf16), double-buffered
        + 2 * D * tH * 2          # W1 slab (bf16), double-buffered
        + 2 * tH * 4              # b1 slab (f32)
        + 2 * tH * D * 2          # W2 slab (bf16), double-buffered
        + 2 * D * 4               # b2 (f32)
        + 2 * tm * D * out_bytes  # output tile, double-buffered
        + tm * D * 4              # f32 accumulator scratch
        + tm * tH * 4             # live f32 intermediate h
    )
    vmem_limit = int(min(vmem_need + (16 << 20), 128 << 20))

    out2 = pl.pallas_call(
        _ffn_kernel,
        out_shape=jax.ShapeDtypeStruct((M, D), x.dtype),
        grid_spec=pltpu.PrefetchScalarGridSpec(
            num_scalar_prefetch=0,
            grid=grid,
            in_specs=[
                pl.BlockSpec((tm, D), lambda i, k: (i, 0)),   # x row tile
                pl.BlockSpec((D, tH), lambda i, k: (0, k)),   # W1 slab
                pl.BlockSpec((1, tH), lambda i, k: (0, k)),   # b1 slab
                pl.BlockSpec((tH, D), lambda i, k: (k, 0)),   # W2 slab
                pl.BlockSpec((1, D), lambda i, k: (0, 0)),    # b2
            ],
            out_specs=pl.BlockSpec((tm, D), lambda i, k: (i, 0)),
            scratch_shapes=[pltpu.VMEM((tm, D), jnp.float32)],
        ),
        compiler_params=pltpu.CompilerParams(
            dimension_semantics=("parallel", "arbitrary"),
            vmem_limit_bytes=vmem_limit,
        ),
    )(x2, w1, b1, w2, b2)

    return out2.reshape(B, T, D)


def init_params(key, n_embd, dtype=jnp.float32):
    """Deterministic synthetic params with PyTorch nn.Linear-like uniform init."""
    k1, k2, k3, k4 = jax.random.split(key, 4)
    hidden = 4 * n_embd
    bound1 = 1.0 / jnp.sqrt(n_embd)
    bound2 = 1.0 / jnp.sqrt(hidden)
    w1 = jax.random.uniform(k1, (n_embd, hidden), dtype, -bound1, bound1)
    b1 = jax.random.uniform(k2, (1, hidden), dtype, -bound1, bound1)
    w2 = jax.random.uniform(k3, (hidden, n_embd), dtype, -bound2, bound2)
    b2 = jax.random.uniform(k4, (1, n_embd), dtype, -bound2, bound2)
    return w1, b1, w2, b2


if __name__ == "__main__":
    key = jax.random.PRNGKey(0)
    B, T, n_embd = 2, 8, 128   # lane-dense feature dim (multiple of 128)
    kx, kp = jax.random.split(key)
    x = jax.random.normal(kx, (B, T, n_embd), jnp.float32)
    w1, b1, w2, b2 = init_params(kp, n_embd)

    out = feed_forward(x, w1, b1, w2, b2)
    jax.block_until_ready(out)
    assert out.shape == (B, T, n_embd)

    f32 = jnp.float32
    hi = jax.lax.Precision.HIGHEST

    # Reference 1: mirrors the kernel's numerics (bf16 matmul operands, f32 acc).
    xb = x.reshape(-1, n_embd).astype(jnp.bfloat16).astype(f32)
    w1b = w1.astype(jnp.bfloat16).astype(f32)
    w2b = w2.astype(jnp.bfloat16).astype(f32)
    h = jnp.maximum(jnp.dot(xb, w1b, precision=hi) + b1, 0.0)
    hb = h.astype(jnp.bfloat16).astype(f32)
    ref_bf16 = (jnp.dot(hb, w2b, precision=hi) + b2).reshape(B, T, n_embd)
    assert jnp.allclose(out, ref_bf16, atol=1e-3, rtol=1e-3)

    # Reference 2: pure-f32 semantics of the PyTorch module (loose tolerance
    # to cover the bf16 matmul path).
    hf = jnp.maximum(jnp.dot(x.reshape(-1, n_embd), w1, precision=hi) + b1, 0.0)
    ref_f32 = (jnp.dot(hf, w2, precision=hi) + b2).reshape(B, T, n_embd)
    assert jnp.allclose(out, ref_f32, atol=5e-2, rtol=5e-2)

    print("KERNEL_OK")
</pallas_src>

<mosaic_0001>
module attributes {stable_mosaic.version = 11 : i64} {
  func.func @_ffn_kernel(%arg0: i32, %arg1: i32, %arg2: memref<16x128xbf16, #tpu.memory_space<vmem>>, %arg3: memref<128x512xbf16, #tpu.memory_space<vmem>>, %arg4: memref<1x512xf32, #tpu.memory_space<vmem>>, %arg5: memref<512x128xbf16, #tpu.memory_space<vmem>>, %arg6: memref<1x128xf32, #tpu.memory_space<vmem>>, %arg7: memref<16x128xf32, #tpu.memory_space<vmem>>, %arg8: memref<16x128xf32, #tpu.memory_space<vmem>>) attributes {dimension_semantics = [#tpu.dimension_semantics<parallel>, #tpu.dimension_semantics<arbitrary>], iteration_bounds = array<i64: 1, 1>, scalar_prefetch = 0 : i64, scratch_operands = 1 : i64, tpu.core_type = #tpu.core_type<tc>, window_params = [{transform_indices = @transform_0, window_bounds = array<i64: 16, 128>}, {transform_indices = @transform_1, window_bounds = array<i64: 128, 512>}, {transform_indices = @transform_2, window_bounds = array<i64: 1, 512>}, {transform_indices = @transform_3, window_bounds = array<i64: 512, 128>}, {pipeline_mode = #tpu.pipeline_mode<synchronous>, transform_indices = @transform_4, window_bounds = array<i64: 1, 128>}, {transform_indices = @transform_5, window_bounds = array<i64: 16, 128>}]} {
    %c0_i32 = arith.constant 0 : i32
    %0 = arith.cmpi eq, %arg1, %c0_i32 : i32
    %1 = arith.extui %0 : i1 to i32
    %c0_i32_0 = arith.constant 0 : i32
    %2 = arith.cmpi ne, %1, %c0_i32_0 : i32
    scf.if %2 {
      %cst_16 = arith.constant 0.000000e+00 : f32
      %20 = vector.broadcast %cst_16 : f32 to vector<16x128xf32>
      %c0_17 = arith.constant 0 : index
      %c0_18 = arith.constant 0 : index
      %21 = vector.load %arg8[%c0_17, %c0_18] : memref<16x128xf32, #tpu.memory_space<vmem>>, vector<16x128xf32>
      tpu.vector_store %arg8[%c0_17, %c0_18], %20 {strides = array<i32>} : memref<16x128xf32, #tpu.memory_space<vmem>>, vector<16x128xf32>,
    } else {
    }
    %c0 = arith.constant 0 : index
    %c0_1 = arith.constant 0 : index
    %3 = vector.load %arg2[%c0, %c0_1] : memref<16x128xbf16, #tpu.memory_space<vmem>>, vector<16x128xbf16>
    %c0_2 = arith.constant 0 : index
    %c0_3 = arith.constant 0 : index
    %4 = vector.load %arg3[%c0_2, %c0_3] : memref<128x512xbf16, #tpu.memory_space<vmem>>, vector<128x512xbf16>
    %cst = arith.constant dense<0.000000e+00> : vector<16x512xf32>
    %5 = tpu.matmul %3, %4, %cst {dimension_numbers = #tpu.dot_dimension_numbers<[1], [0], [0], [1], [0, 0, 1, 1], [], []>} : vector<16x128xbf16>, vector<128x512xbf16>, vector<16x512xf32> -> vector<16x512xf32>
    %c0_4 = arith.constant 0 : index
    %c0_5 = arith.constant 0 : index
    %6 = vector.load %arg4[%c0_4, %c0_5] : memref<1x512xf32, #tpu.memory_space<vmem>>, vector<1x512xf32>
    %7 = vector.broadcast %6 : vector<1x512xf32> to vector<16x512xf32>
    %8 = arith.addf %5, %7 : vector<16x512xf32>
    %cst_6 = arith.constant 0.000000e+00 : f32
    %9 = vector.broadcast %cst_6 : f32 to vector<16x512xf32>
    %10 = arith.maximumf %8, %9 : vector<16x512xf32>
    %c0_7 = arith.constant 0 : index
    %c0_8 = arith.constant 0 : index
    %11 = vector.load %arg8[%c0_7, %c0_8] : memref<16x128xf32, #tpu.memory_space<vmem>>, vector<16x128xf32>
    %12 = arith.truncf %10 : vector<16x512xf32> to vector<16x512xbf16>
    %c0_9 = arith.constant 0 : index
    %c0_10 = arith.constant 0 : index
    %13 = vector.load %arg5[%c0_9, %c0_10] : memref<512x128xbf16, #tpu.memory_space<vmem>>, vector<512x128xbf16>
    %cst_11 = arith.constant dense<0.000000e+00> : vector<16x128xf32>
    %14 = tpu.matmul %12, %13, %cst_11 {dimension_numbers = #tpu.dot_dimension_numbers<[1], [0], [0], [1], [0, 0, 1, 1], [], []>} : vector<16x512xbf16>, vector<512x128xbf16>, vector<16x128xf32> -> vector<16x128xf32>
    %15 = arith.addf %11, %14 : vector<16x128xf32>
    %c0_12 = arith.constant 0 : index
    %c0_13 = arith.constant 0 : index
    %16 = vector.load %arg8[%c0_12, %c0_13] : memref<16x128xf32, #tpu.memory_space<vmem>>, vector<16x128xf32>
    tpu.vector_store %arg8[%c0_12, %c0_13], %15 {strides = array<i32>} : memref<16x128xf32, #tpu.memory_space<vmem>>, vector<16x128xf32>,
    %c0_i32_14 = arith.constant 0 : i32
    %17 = arith.cmpi eq, %arg1, %c0_i32_14 : i32
    %18 = arith.extui %17 : i1 to i32
    %c0_i32_15 = arith.constant 0 : i32
    %19 = arith.cmpi ne, %18, %c0_i32_15 : i32
    scf.if %19 {
      %c0_16 = arith.constant 0 : index
      %c0_17 = arith.constant 0 : index
      %20 = vector.load %arg8[%c0_16, %c0_17] : memref<16x128xf32, #tpu.memory_space<vmem>>, vector<16x128xf32>
      %c0_18 = arith.constant 0 : index
      %c0_19 = arith.constant 0 : index
      %21 = vector.load %arg6[%c0_18, %c0_19] : memref<1x128xf32, #tpu.memory_space<vmem>>, vector<1x128xf32>
      %22 = vector.broadcast %21 : vector<1x128xf32> to vector<16x128xf32>
      %23 = arith.addf %20, %22 : vector<16x128xf32>
      %c0_20 = arith.constant 0 : index
      %c0_21 = arith.constant 0 : index
      %24 = vector.load %arg7[%c0_20, %c0_21] : memref<16x128xf32, #tpu.memory_space<vmem>>, vector<16x128xf32>
      tpu.vector_store %arg7[%c0_20, %c0_21], %23 {strides = array<i32>} : memref<16x128xf32, #tpu.memory_space<vmem>>, vector<16x128xf32>,
    } else {
    }
    return
  }
  func.func @transform_0(%arg0: i32, %arg1: i32) -> (i32, i32) {
    %c0_i32 = arith.constant 0 : i32
    %c0_i32_0 = arith.constant 0 : i32
    return %arg0, %c0_i32 : i32, i32
  }
  func.func @transform_1(%arg0: i32, %arg1: i32) -> (i32, i32) {
    %c0_i32 = arith.constant 0 : i32
    %c0_i32_0 = arith.constant 0 : i32
    return %c0_i32, %arg1 : i32, i32
  }
  func.func @transform_2(%arg0: i32, %arg1: i32) -> (i32, i32) {
    %c0_i32 = arith.constant 0 : i32
    %c0_i32_0 = arith.constant 0 : i32
    return %c0_i32, %arg1 : i32, i32
  }
  func.func @transform_3(%arg0: i32, %arg1: i32) -> (i32, i32) {
    %c0_i32 = arith.constant 0 : i32
    %c0_i32_0 = arith.constant 0 : i32
    return %arg1, %c0_i32 : i32, i32
  }
  func.func @transform_4(%arg0: i32, %arg1: i32) -> (i32, i32) {
    %c0_i32 = arith.constant 0 : i32
    %c0_i32_0 = arith.constant 0 : i32
    %c0_i32_1 = arith.constant 0 : i32
    return %c0_i32, %c0_i32_0 : i32, i32
  }
  func.func @transform_5(%arg0: i32, %arg1: i32) -> (i32, i32) {
    %c0_i32 = arith.constant 0 : i32
    %c0_i32_0 = arith.constant 0 : i32
    return %arg0, %c0_i32 : i32, i32
  }
}

</mosaic_0001>

<bundles_post_ra>
// kernel: feed_forward.1
= control target key start
LH: loop header
LB: loop body
LE: loop exit
PB: predicated region body
PF: predicated region fallthrough
CT: control target
= control target key end

     0   :  { %s1342_s0 = inlined_call_operand.vmem [shape: bf16[16,128], index: 0, kind: input, shape index: {}]   ;;  %s1343_s1 = inlined_call_operand.vmem [shape: bf16[128,512], index: 1, kind: input, shape index: {}]   ;;  %s1344_s2 = inlined_call_operand.vmem [shape: f32[1,512], index: 2, kind: input, shape index: {}]   ;;  %s1345_s3 = inlined_call_operand.vmem [shape: bf16[512,128], index: 3, kind: input, shape index: {}]   ;;  %s1346_s4 = inlined_call_operand.vmem [shape: f32[1,128], index: 4, kind: input, shape index: {}]   ;;  %s1347_s5 = inlined_call_operand.hbm [shape: f32[16,128], index: 5, kind: output, shape index: {}]  }
   0x1   :  { %v772_v0 = vld [vmem:[%s1343_s1 + $0xe0] sm:$0xf]  ;;  %v945_v1 = vld [vmem:[%s1343_s1 + $0xec] sm:$0xf0]  ;;  %v943_v2 = vld [vmem:[%s1343_s1 + $0xe4] sm:$0xf] }
   0x2   :  { %v773_v3 = vor.u32 %v945_v1, %v772_v0  ;;  %v774_v4 = vld [vmem:[%s1343_s1 + $0xf0] sm:$0xf0]  ;;  %v780_v5 = vld [vmem:[%s1343_s1 + $0xe8] sm:$0xf]  ;;  %v946_v6 = vld [vmem:[%s1343_s1 + $0xf4] sm:$0xf0] }
   0x3   :  { %v777_v7 = vor.u32 %v943_v2, %v774_v4  ;;  %v781_v8 = vor.u32 %v946_v6, %v780_v5  ;;  %v944_v9 = vld [vmem:[%s1343_s1 + $0xec] sm:$0xf]  ;;  %v782_v10 = vld [vmem:[%s1343_s1 + $0xf8] sm:$0xf0]  ;;  %v756_v11 = vld [vmem:[%s1343_s1 + $0xc0] sm:$0xf] }
   0x4   :  { %237 = vmatpush.bf16.msra.mxu0 %v773_v3  ;;  %v785_v12 = vor.u32 %v944_v9, %v782_v10  ;;  %v941_v13 = vld [vmem:[%s1343_s1 + $0xcc] sm:$0xf0]  ;;  %v939_v14 = vld [vmem:[%s1343_s1 + $0xc4] sm:$0xf]  ;;  %v758_v15 = vld [vmem:[%s1343_s1 + $0xd0] sm:$0xf0] }
   0x5   :  { %251 = vmatpush.bf16.msra.mxu1 %v777_v7  ;;  %265 = vmatpush.bf16.msra.mxu2 %v781_v8  ;;  %v757_v16 = vor.u32 %v941_v13, %v756_v11  ;;  %v761_v17 = vor.u32 %v939_v14, %v758_v15  ;;  %v764_v18 = vld [vmem:[%s1343_s1 + $0xc8] sm:$0xf]  ;;  %v942_v19 = vld [vmem:[%s1343_s1 + $0xd4] sm:$0xf0]  ;;  %v940_v20 = vld [vmem:[%s1343_s1 + $0xcc] sm:$0xf] }
   0x6   :  { %279 = vmatpush.bf16.msra.mxu3 %v785_v12  ;;  %v765_v21 = vor.u32 %v942_v19, %v764_v18  ;;  %v766_v22 = vld [vmem:[%s1343_s1 + $0xd8] sm:$0xf0]  ;;  %v740_v23 = vld [vmem:[%s1343_s1 + $0xa0] sm:$0xf]  ;;  %v937_v24 = vld [vmem:[%s1343_s1 + $0xac] sm:$0xf0] }
   0x7   :  { %v769_v25 = vor.u32 %v940_v20, %v766_v22  ;;  %v935_v26 = vld [vmem:[%s1343_s1 + $0xa4] sm:$0xf]  ;;  %v742_v27 = vld [vmem:[%s1343_s1 + $0xb0] sm:$0xf0]  ;;  %v748_v28 = vld [vmem:[%s1343_s1 + $0xa8] sm:$0xf]  ;;  %v741_v29 = vor.u32 %v937_v24, %v740_v23 }
   0x8   :  { %238 = vmatpush.bf16.msra.mxu0 %v757_v16  ;;  %v938_v30 = vld [vmem:[%s1343_s1 + $0xb4] sm:$0xf0]  ;;  %v936_v31 = vld [vmem:[%s1343_s1 + $0xac] sm:$0xf]  ;;  %v750_v32 = vld [vmem:[%s1343_s1 + $0xb8] sm:$0xf0]  ;;  %v745_v33 = vor.u32 %v935_v26, %v742_v27 }
   0x9   :  { %252 = vmatpush.bf16.msra.mxu1 %v761_v17  ;;  %266 = vmatpush.bf16.msra.mxu2 %v765_v21  ;;  %v749_v34 = vor.u32 %v938_v30, %v748_v28  ;;  %v724_v35 = vld [vmem:[%s1343_s1 + $0x80] sm:$0xf]  ;;  %v933_v36 = vld [vmem:[%s1343_s1 + $0x8c] sm:$0xf0]  ;;  %v931_v37 = vld [vmem:[%s1343_s1 + $0x84] sm:$0xf]  ;;  %v753_v38 = vor.u32 %v936_v31, %v750_v32 }
   0xa   :  { %280 = vmatpush.bf16.msra.mxu3 %v769_v25  ;;  %v726_v39 = vld [vmem:[%s1343_s1 + $0x90] sm:$0xf0]  ;;  %v732_v40 = vld [vmem:[%s1343_s1 + $0x88] sm:$0xf]  ;;  %v934_v41 = vld [vmem:[%s1343_s1 + $0x94] sm:$0xf0]  ;;  %v725_v44 = vor.u32 %v933_v36, %v724_v35 }
   0xb   :  { %v932_v42 = vld [vmem:[%s1343_s1 + $0x8c] sm:$0xf]  ;;  %v734_v43 = vld [vmem:[%s1343_s1 + $0x98] sm:$0xf0]  ;;  %v729_v45 = vor.u32 %v931_v37, %v726_v39  ;;  %v733_v46 = vor.u32 %v934_v41, %v732_v40  ;;  %v708_v47 = vld [vmem:[%s1343_s1 + $0x60] sm:$0xf] }
   0xc   :  { %239 = vmatpush.bf16.msra.mxu0 %v741_v29  ;;  %v929_v48 = vld [vmem:[%s1343_s1 + $0x6c] sm:$0xf0]  ;;  %v927_v49 = vld [vmem:[%s1343_s1 + $0x64] sm:$0xf]  ;;  %v737_v50 = vor.u32 %v932_v42, %v734_v43  ;;  %v710_v51 = vld [vmem:[%s1343_s1 + $0x70] sm:$0xf0] }
   0xd   :  { %253 = vmatpush.bf16.msra.mxu1 %v745_v33  ;;  %267 = vmatpush.bf16.msra.mxu2 %v749_v34  ;;  %v716_v52 = vld [vmem:[%s1343_s1 + $0x68] sm:$0xf]  ;;  %v930_v53 = vld [vmem:[%s1343_s1 + $0x74] sm:$0xf0]  ;;  %v928_v54 = vld [vmem:[%s1343_s1 + $0x6c] sm:$0xf]  ;;  %v709_v56 = vor.u32 %v929_v48, %v708_v47  ;;  %v713_v57 = vor.u32 %v927_v49, %v710_v51 }
   0xe   :  { %281 = vmatpush.bf16.msra.mxu3 %v753_v38  ;;  %v718_v55 = vld [vmem:[%s1343_s1 + $0x78] sm:$0xf0]  ;;  %v717_v58 = vor.u32 %v930_v53, %v716_v52  ;;  %v692_v59 = vld [vmem:[%s1343_s1 + $0x40] sm:$0xf]  ;;  %v925_v60 = vld [vmem:[%s1343_s1 + $0x4c] sm:$0xf0] }
   0xf   :  { %v923_v61 = vld [vmem:[%s1343_s1 + $0x44] sm:$0xf]  ;;  %v721_v62 = vor.u32 %v928_v54, %v718_v55  ;;  %v694_v63 = vld [vmem:[%s1343_s1 + $0x50] sm:$0xf0]  ;;  %v700_v0 = vld [vmem:[%s1343_s1 + $0x48] sm:$0xf]  ;;  %v693_v4 = vor.u32 %v925_v60, %v692_v59 }
  0x10   :  { %240 = vmatpush.bf16.msra.mxu0 %v725_v44  ;;  %v926_v1 = vld [vmem:[%s1343_s1 + $0x54] sm:$0xf0]  ;;  %v924_v2 = vld [vmem:[%s1343_s1 + $0x4c] sm:$0xf]  ;;  %v702_v3 = vld [vmem:[%s1343_s1 + $0x58] sm:$0xf0]  ;;  %v697_v5 = vor.u32 %v923_v61, %v694_v63 }
  0x11   :  { %254 = vmatpush.bf16.msra.mxu1 %v729_v45  ;;  %268 = vmatpush.bf16.msra.mxu2 %v733_v46  ;;  %v701_v6 = vor.u32 %v926_v1, %v700_v0  ;;  %v676_v7 = vld [vmem:[%s1343_s1 + $0x20] sm:$0xf]  ;;  %v921_v8 = vld [vmem:[%s1343_s1 + $0x2c] sm:$0xf0]  ;;  %v919_v9 = vld [vmem:[%s1343_s1 + $0x24] sm:$0xf]  ;;  %v705_v10 = vor.u32 %v924_v2, %v702_v3 }
  0x12   :  { %282 = vmatpush.bf16.msra.mxu3 %v737_v50  ;;  %v678_v11 = vld [vmem:[%s1343_s1 + $0x30] sm:$0xf0]  ;;  %v684_v12 = vld [vmem:[%s1343_s1 + $0x28] sm:$0xf]  ;;  %v922_v13 = vld [vmem:[%s1343_s1 + $0x34] sm:$0xf0]  ;;  %v677_v16 = vor.u32 %v921_v8, %v676_v7 }
  0x13   :  { %v920_v14 = vld [vmem:[%s1343_s1 + $0x2c] sm:$0xf]  ;;  %v686_v15 = vld [vmem:[%s1343_s1 + $0x38] sm:$0xf0]  ;;  %v681_v17 = vor.u32 %v919_v9, %v678_v11  ;;  %v685_v18 = vor.u32 %v922_v13, %v684_v12  ;;  %v660_v19 = vld [vmem:[%s1343_s1] sm:$0xf] }
  0x14   :  { %241 = vmatpush.bf16.msra.mxu0 %v709_v56  ;;  %v917_v20 = vld [vmem:[%s1343_s1 + $0xc] sm:$0xf0]  ;;  %v915_v21 = vld [vmem:[%s1343_s1 + $0x4] sm:$0xf]  ;;  %v689_v22 = vor.u32 %v920_v14, %v686_v15  ;;  %v662_v23 = vld [vmem:[%s1343_s1 + $0x10] sm:$0xf0] }
  0x15   :  { %255 = vmatpush.bf16.msra.mxu1 %v713_v57  ;;  %269 = vmatpush.bf16.msra.mxu2 %v717_v58  ;;  %v668_v24 = vld [vmem:[%s1343_s1 + $0x8] sm:$0xf]  ;;  %v918_v25 = vld [vmem:[%s1343_s1 + $0x14] sm:$0xf0]  ;;  %v916_v26 = vld [vmem:[%s1343_s1 + $0xc] sm:$0xf]  ;;  %v661_v28 = vor.u32 %v917_v20, %v660_v19 }
  0x16   :  { %283 = vmatpush.bf16.msra.mxu3 %v721_v62  ;;  %v670_v27 = vld [vmem:[%s1343_s1 + $0x18] sm:$0xf0] }
  0x18   :  { %242 = vmatpush.bf16.msra.mxu0 %v693_v4 }
  0x19   :  { %256 = vmatpush.bf16.msra.mxu1 %v697_v5  ;;  %270 = vmatpush.bf16.msra.mxu2 %v701_v6 }
  0x1a   :  { %284 = vmatpush.bf16.msra.mxu3 %v705_v10 }
  0x1c   :  { %243 = vmatpush.bf16.msra.mxu0 %v677_v16 }
  0x1d   :  { %10 = vsyncpa [#allocation4], 0  ;;  %257 = vmatpush.bf16.msra.mxu1 %v681_v17  ;;  %271 = vmatpush.bf16.msra.mxu2 %v685_v18  ;;  %v665_v29 = vor.u32 %v915_v21, %v662_v23  ;;  %v669_v30 = vor.u32 %v918_v25, %v668_v24  ;;  %v673_v31 = vor.u32 %v916_v26, %v670_v27  ;;  %v954_v32 = vld [vmem:[%s1345_s3 + $0x38] sm:$0xff]  ;;  %v914_v33 = vld [vmem:[%s1342_s0] sm:$0xff]  ;;  %s1009_s8 = smov [#allocation3]   ;;  %s642_s12 = sshll.u32 %s1347_s5, 4  ;;  %s643_s12 = int_to_ptr.hbm [resolvable:$true] %s642_s12 }
  0x1e   :  { %285 = vmatpush.bf16.msra.mxu3 %v689_v22  ;;  %v962_v34 = vld [vmem:[%s1345_s3 + $0x78] sm:$0xff]  ;;  %v953_v36 = vld [vmem:[%s1345_s3 + $0x30] sm:$0xff]  ;;  %v952_v40 = vld [vmem:[%s1345_s3 + $0x28] sm:$0xff]  ;;  %s640_s9 = sshll.u32 %s1009_s8, 4  ;;  %s1011_s13 = smov 8   ;;  %s641_s9 = int_to_ptr.vmem [resolvable:$true] %s640_s9 }
  0x1f   :  { %v970_v35 = vld [vmem:[%s1345_s3 + $0xb8] sm:$0xff]  ;;  %v961_v38 = vld [vmem:[%s1345_s3 + $0x70] sm:$0xff]  ;;  %v960_v42 = vld [vmem:[%s1345_s3 + $0x68] sm:$0xff] }
  0x20   :  { %244 = vmatpush.bf16.msra.mxu0 %v661_v28  ;;  %v978_v37 = vld [vmem:[%s1345_s3 + $0xf8] sm:$0xff]  ;;  %v969_v39 = vld [vmem:[%s1345_s3 + $0xb0] sm:$0xff]  ;;  %v968_v43 = vld [vmem:[%s1345_s3 + $0xa8] sm:$0xff] }
  0x21   :  { %258 = vmatpush.bf16.msra.mxu1 %v665_v29  ;;  %272 = vmatpush.bf16.msra.mxu2 %v669_v30  ;;  %v977_v41 = vld [vmem:[%s1345_s3 + $0xf0] sm:$0xff]  ;;  %v951_v44 = vld [vmem:[%s1345_s3 + $0x20] sm:$0xff]  ;;  %v976_v45 = vld [vmem:[%s1345_s3 + $0xe8] sm:$0xff] }
  0x22   :  { %286 = vmatpush.bf16.msra.mxu3 %v673_v31  ;;  %v959_v46 = vld [vmem:[%s1345_s3 + $0x60] sm:$0xff]  ;;  %v950_v47 = vld [vmem:[%s1345_s3 + $0x18] sm:$0xff]  ;;  %v949_v51 = vld [vmem:[%s1345_s3 + $0x10] sm:$0xff] }
  0x23   :  { %245 = vmatmul.bf16.vlgmr.msra.gmra.mxu0 %v914_v33  ;;  %v958_v48 = vld [vmem:[%s1345_s3 + $0x58] sm:$0xff]  ;;  %v967_v49 = vld [vmem:[%s1345_s3 + $0xa0] sm:$0xff]  ;;  %v957_v52 = vld [vmem:[%s1345_s3 + $0x50] sm:$0xff] }
  0x24   :  { %563 = vmatpush.bf16.msrb.mxu0 %v954_v32  ;;  %259 = vmatmul.bf16.vlgmr.msra.gmra.mxu1 %v914_v33  ;;  %v975_v50 = vld [vmem:[%s1345_s3 + $0xe0] sm:$0xff]  ;;  %v966_v53 = vld [vmem:[%s1345_s3 + $0x98] sm:$0xff]  ;;  %v948_v55 = vld [vmem:[%s1345_s3 + $0x8] sm:$0xff] }
  0x25   :  { %577 = vmatpush.bf16.msrb.mxu1 %v962_v34  ;;  %273 = vmatmul.bf16.vlgmr.msra.gmra.mxu2 %v914_v33  ;;  %v974_v54 = vld [vmem:[%s1345_s3 + $0xd8] sm:$0xff]  ;;  %v956_v56 = vld [vmem:[%s1345_s3 + $0x48] sm:$0xff]  ;;  %v965_v57 = vld [vmem:[%s1345_s3 + $0x90] sm:$0xff] }
  0x26   :  { %287 = vmatmul.bf16.vlgmr.msra.gmra.mxu3 %v914_v33  ;;  %591 = vmatpush.bf16.msrb.mxu2 %v970_v35  ;;  %v973_v58 = vld [vmem:[%s1345_s3 + $0xd0] sm:$0xff]  ;;  %v947_v59 = vld [vmem:[%s1345_s3] sm:$0xff]  ;;  %v964_v61 = vld [vmem:[%s1345_s3 + $0x88] sm:$0xff] }
  0x27   :  { %605 = vmatpush.bf16.msrb.mxu3 %v978_v37  ;;  %v955_v60 = vld [vmem:[%s1345_s3 + $0x40] sm:$0xff]  ;;  %v972_v62 = vld [vmem:[%s1345_s3 + $0xc8] sm:$0xff] }
  0x28   :  { %564 = vmatpush.bf16.msrb.mxu0 %v953_v36  ;;  %v963_v63 = vld [vmem:[%s1345_s3 + $0x80] sm:$0xff] }
  0x29   :  { %578 = vmatpush.bf16.msrb.mxu1 %v961_v38  ;;  %v971_v0 = vld [vmem:[%s1345_s3 + $0xc0] sm:$0xff] }
  0x2a   :  { %592 = vmatpush.bf16.msrb.mxu2 %v969_v39  ;;  %v61_v1 = vld [vmem:[%s1344_s2] sm:$0xf] }
  0x2b   :  { %606 = vmatpush.bf16.msrb.mxu3 %v977_v41  ;;  %v63_v3 = vperm.slane %v61_v1, 0  ;;  %v64_v5 = vperm.slane %v61_v1, 1  ;;  %v65_v15 = vperm.slane %v61_v1, 2  ;;  %v66_v17 = vperm.slane %v61_v1, 3 }
  0x2c   :  { %565 = vmatpush.bf16.msrb.mxu0 %v952_v40  ;;  %v982_v40 = vld [vmem:[%s1346_s4] ss:$0 sm:$0xff]  ;;  %s1010_s4 = smov 128  }
  0x2d   :  { %579 = vmatpush.bf16.msrb.mxu1 %v960_v42 }
  0x2e   :  { %593 = vmatpush.bf16.msrb.mxu2 %v968_v43 }
  0x2f   :  { %607 = vmatpush.bf16.msrb.mxu3 %v976_v45 }
  0x30   :  { %566 = vmatpush.bf16.msrb.mxu0 %v951_v44 }
  0x31   :  { %580 = vmatpush.bf16.msrb.mxu1 %v959_v46 }
  0x32   :  { %594 = vmatpush.bf16.msrb.mxu2 %v967_v49 }
  0x33   :  { %608 = vmatpush.bf16.msrb.mxu3 %v975_v50 }
  0x34   :  { %567 = vmatpush.bf16.msrb.mxu0 %v950_v47 }
  0x35   :  { %581 = vmatpush.bf16.msrb.mxu1 %v958_v48 }
  0x36   :  { %595 = vmatpush.bf16.msrb.mxu2 %v966_v53 }
  0x37   :  { %609 = vmatpush.bf16.msrb.mxu3 %v974_v54 }
  0x38   :  { %568 = vmatpush.bf16.msrb.mxu0 %v949_v51 }
  0x39   :  { %582 = vmatpush.bf16.msrb.mxu1 %v957_v52 }
  0x3a   :  { %596 = vmatpush.bf16.msrb.mxu2 %v965_v57 }
  0x3b   :  { %610 = vmatpush.bf16.msrb.mxu3 %v973_v58 }
  0x3c   :  { %569 = vmatpush.bf16.msrb.mxu0 %v948_v55 }
  0x3d   :  { %583 = vmatpush.bf16.msrb.mxu1 %v956_v56 }
  0x3e   :  { %597 = vmatpush.bf16.msrb.mxu2 %v964_v61 }
  0x3f   :  { %611 = vmatpush.bf16.msrb.mxu3 %v972_v62 }
  0x40   :  { %570 = vmatpush.bf16.msrb.mxu0 %v947_v59 }
  0x41   :  { %584 = vmatpush.bf16.msrb.mxu1 %v955_v60 }
  0x42   :  { %598 = vmatpush.bf16.msrb.mxu2 %v963_v63 }
  0x43   :  { %612 = vmatpush.bf16.msrb.mxu3 %v971_v0 }
  0xa0   :  { %v246_v2 = vpop.f32.mrf.mxu0 }
  0xa1   :  { %v260_v4 = vpop.f32.mrf.mxu1  ;;  %v247_v6 = vadd.f32 %v246_v2, %v63_v3 }
  0xa2   :  { %v261_v7 = vadd.f32 %v260_v4, %v64_v5 }
  0xa3   :  { %v293_v11 = vmax.f32 %v247_v6, 0.0 }
  0xa4   :  { %v294_v14 = vmax.f32 %v261_v7, 0.0 }
  0xa8   :  { %v274_v8 = vpop.f32.mrf.mxu2  ;;  %v248_v10 = vpop.f32.mrf.mxu0 }
  0xa9   :  { %v288_v9 = vpop.f32.mrf.mxu3  ;;  %v249_v12 = vadd.f32 %v248_v10, %v63_v3  ;;  %v262_v13 = vpop.f32.mrf.mxu1  ;;  %v275_v21 = vadd.f32 %v274_v8, %v65_v15 }
  0xaa   :  { %v263_v16 = vadd.f32 %v262_v13, %v64_v5  ;;  %v289_v23 = vadd.f32 %v288_v9, %v66_v17 }
  0xab   :  { %v297_v18 = vmax.f32 %v249_v12, 0.0  ;;  %v295_v28 = vmax.f32 %v275_v21, 0.0 }
  0xac   :  { %v298_v19 = vmax.f32 %v263_v16, 0.0  ;;  %v296_v30 = vmax.f32 %v289_v23, 0.0 }
  0xad   :  { %v303_v20 = vpack.c.bf16 %v297_v18, %v293_v11 }
  0xae   :  { %v304_v22 = vpack.c.bf16 %v298_v19, %v294_v14 }
  0xaf   :  { %571 = vmatmul.bf16.vlgmr.msrb.gmra.mxu0 %v303_v20 }
  0xb0   :  { %v276_v24 = vpop.f32.mrf.mxu2  ;;  %585 = vmatmul.bf16.vlgmr.msrb.gmra.mxu1 %v304_v22 }
  0xb1   :  { %v277_v25 = vadd.f32 %v276_v24, %v65_v15  ;;  %v290_v26 = vpop.f32.mrf.mxu3 }
  0xb2   :  { %v291_v27 = vadd.f32 %v290_v26, %v66_v17 }
  0xb3   :  { %v299_v29 = vmax.f32 %v277_v25, 0.0 }
  0xb4   :  { %v300_v31 = vmax.f32 %v291_v27, 0.0 }
  0xb5   :  { %v305_v32 = vpack.c.bf16 %v299_v29, %v295_v28 }
  0xb6   :  { %v306_v33 = vpack.c.bf16 %v300_v31, %v296_v30 }
  0xb7   :  { %599 = vmatmul.bf16.vlgmr.msrb.gmra.mxu2 %v305_v32 }
  0xb8   :  { %613 = vmatmul.bf16.vlgmr.msrb.gmra.mxu3 %v306_v33 }
 0x12c   :  { %v572_v34 = vpop.f32.mrf.mxu0 }
 0x12d   :  { %v586_v35 = vpop.f32.mrf.mxu1 }
 0x12e   :  { %v587_v36 = vadd.f32 %v586_v35, %v572_v34 }
 0x134   :  { %v574_v42 = vpop.f32.mrf.mxu0 }
 0x135   :  { %v588_v43 = vpop.f32.mrf.mxu1 }
 0x136   :  { %v589_v45 = vadd.f32 %v588_v43, %v574_v42 }
 0x13a   :  { %v600_v37 = vpop.f32.mrf.mxu2 }
 0x13b   :  { %v601_v38 = vadd.f32 %v600_v37, %v587_v36  ;;  %v614_v39 = vpop.f32.mrf.mxu3 }
 0x13d   :  { %v615_v41 = vadd.f32 %v614_v39, %v601_v38 }
 0x13f   :  { %v632_v44 = vadd.f32 %v982_v40, %v615_v41 }
 0x141   :  { %634 = vst [vmem:[#allocation3] sm:$0xff] %v632_v44 }
 0x142   :  { %v602_v46 = vpop.f32.mrf.mxu2 }
 0x143   :  { %v603_v47 = vadd.f32 %v602_v46, %v589_v45  ;;  %v616_v48 = vpop.f32.mrf.mxu3 }
 0x145   :  { %v617_v49 = vadd.f32 %v616_v48, %v603_v47 }
 0x147   :  { %v633_v50 = vadd.f32 %v982_v40, %v617_v49 }
 0x149   :  { %635 = vst [vmem:[#allocation3 + $0x8] sm:$0xff] %v633_v50 }
 0x14a   :  { %648 = dma.vmem_to_hbm [thread:$0]  %s641_s9, 256, %s643_s12, [#allocation4], %s1010_s4, %s1010_s4, %s1011_s13  }
 0x14b   :  { %1007 = dma.done.wait [#allocation4], 256  }
 0x14c   :  { %1008 = vsyncadd [#allocation4], 4294967040 }
 0x14d   :  { %653 = vsyncpa [#allocation4], 1 }

</bundles_post_ra>
